<compile_context>
chip_gen: v7x
topology: tpu7x:2x2x1
jax: 0.10.0
libtpu: 0.0.40
codegen_flags: <defaults>
</compile_context>

<pallas_src>
import functools

import jax
import jax.numpy as jnp
import numpy as np
from jax.experimental import pallas as pl
from jax.experimental.pallas import tpu as pltpu


def _round_up(a, m):
    return (a + m - 1) // m * m


# ---------------------------------------------------------------------------
# Kernel 1: quantize + dequantize of the weight matrix (randomized rounding).
#   Bernoulli uniforms are generated outside the kernel (portable: works both
#   on Mosaic and in interpret mode).
# ---------------------------------------------------------------------------
def _quant_dequant_kernel(w_ref, u_ref, out_ref, *, num_bits):
    w = w_ref[...].astype(jnp.float32)
    u = u_ref[...].astype(jnp.float32)

    qmin = float(-(2 ** (num_bits - 1)))
    qmax = float(2 ** (num_bits - 1) - 1)

    min_val = jnp.min(w)
    max_val = jnp.max(w)
    rng = max_val - min_val

    # Guard degenerate case (constant weights): scale would be 0 -> inf/NaN.
    safe = rng > 0.0
    scale = jnp.where(safe, rng / (qmax - qmin), jnp.float32(1.0))
    inv_scale = 1.0 / scale                       # single scalar reciprocal
    zero_point = qmin - min_val * inv_scale       # kept unrounded, as in the spec

    q = w * inv_scale + zero_point
    fl = jnp.floor(q)
    prob = q - fl
    bern = (u < prob).astype(jnp.float32)         # randomized (Bernoulli) rounding
    q_rounded = jnp.clip(fl + bern, qmin, qmax)

    dq = scale * (q_rounded - zero_point)
    out_ref[...] = jnp.where(safe, dq, w)


def quant_dequant(weights, uniform, *, num_bits=8):
    return pl.pallas_call(
        functools.partial(_quant_dequant_kernel, num_bits=num_bits),
        out_shape=jax.ShapeDtypeStruct(weights.shape, jnp.float32),
        in_specs=[
            pl.BlockSpec(memory_space=pltpu.MemorySpace.VMEM),   # weights
            pl.BlockSpec(memory_space=pltpu.MemorySpace.VMEM),   # uniforms
        ],
        out_specs=pl.BlockSpec(memory_space=pltpu.MemorySpace.VMEM),
    )(weights, uniform)


# ---------------------------------------------------------------------------
# Kernel 2: one-hot weighted gather as an MXU matmul (the hot path).
#   S[b, r]  = sum_c wx[b, c] * (hx[b, c] == r)      (VPU compare/select)
#   out[b,:] = S @ table                              (MXU, f32 accumulate)
# ---------------------------------------------------------------------------
def _sce_forward_kernel(hx_ref, wx_ref, table_ref, out_ref):
    rows = table_ref.shape[0]
    tile_b = out_ref.shape[0]
    n_chunks = hx_ref.shape[1]

    hx = hx_ref[...]                               # (TILE_B, n_chunks) int32
    wx = wx_ref[...].astype(jnp.float32)           # (TILE_B, n_chunks) f32
    row_ids = jax.lax.broadcasted_iota(jnp.int32, (tile_b, rows), 1)

    s = jnp.zeros((tile_b, rows), jnp.float32)
    for c in range(n_chunks):                      # static, small -> fully unrolled
        s = s + jnp.where(hx[:, c:c + 1] == row_ids, wx[:, c:c + 1], 0.0)

    # NOTE: for large production configs on v6e/v7x, cast `s` and the table to
    # bf16 here (keep preferred_element_type=f32) to feed the MXU at full rate.
    out_ref[...] = jnp.dot(
        s, table_ref[...].astype(jnp.float32),
        preferred_element_type=jnp.float32,
    ).astype(out_ref.dtype)


def sce_gather_matmul(table, hx, wx, *, tile_b=128, out_dtype=jnp.float32):
    """out[b, :] = sum_c wx[b, c] * table[hx[b, c], :]."""
    bs, n_chunks = hx.shape
    rows, dim = table.shape

    tile_b = min(tile_b, _round_up(bs, 8))
    bs_pad = _round_up(bs, tile_b)
    if bs_pad != bs:
        pad = bs_pad - bs
        hx = jnp.pad(hx, ((0, pad), (0, 0)))       # pad with row index 0 (valid)
        wx = jnp.pad(wx, ((0, pad), (0, 0)))       # pad with weight 0 -> zero rows

    out = pl.pallas_call(
        _sce_forward_kernel,
        out_shape=jax.ShapeDtypeStruct((bs_pad, dim), out_dtype),
        grid=(bs_pad // tile_b,),
        in_specs=[
            pl.BlockSpec((tile_b, n_chunks), lambda b: (b, 0)),   # hx tile
            pl.BlockSpec((tile_b, n_chunks), lambda b: (b, 0)),   # wx tile
            pl.BlockSpec((rows, dim), lambda b: (0, 0)),          # table resident
        ],
        out_specs=pl.BlockSpec((tile_b, dim), lambda b: (b, 0)),  # dense tile store
        compiler_params=pltpu.CompilerParams(
            dimension_semantics=("parallel",)),
    )(hx, wx, table)
    return out[:bs]


# ---------------------------------------------------------------------------
# Full forward pass of SparseCodingEmbedding.
# ---------------------------------------------------------------------------
def sce_forward(table, weights, h, x, *, num_bits=8, seed=0):
    """Returns (out, dequantized_weights) — mirrors module.forward()."""
    if num_bits is not None:
        uniform = jax.random.uniform(
            jax.random.PRNGKey(seed), weights.shape, jnp.float32)
        weights = quant_dequant(weights, uniform, num_bits=num_bits)

    # Glue: vocab-level gathers (tiny (bs, n_chunks) tables).
    hx = jnp.take(h, x, axis=0).astype(jnp.int32)          # (bs, n_chunks)
    wx = jnp.take(weights, x, axis=0).astype(jnp.float32)  # (bs, n_chunks)

    out = sce_gather_matmul(table, hx, wx)
    return out, weights


if __name__ == "__main__":
    # Module config (small, consistent with __init__): rows = num_params // dim
    num_params, vocab, dim, n_chunks = 8192, 32, 128, 8
    bs = 16
    rows = num_params // dim                                # 64

    key = jax.random.PRNGKey(0)
    k1, k2, k3, k4 = jax.random.split(key, 4)
    # deterministic parameter init mirroring reset_parameters()
    table = jax.random.uniform(k1, (rows, dim), jnp.float32,
                               minval=-dim ** -0.5, maxval=dim ** -0.5)
    weights = jax.random.uniform(k2, (vocab, n_chunks), jnp.float32,
                                 minval=-1.0, maxval=1.0)
    h = jax.random.randint(k3, (vocab, n_chunks), 0, rows, dtype=jnp.int32)
    x = jax.random.randint(k4, (bs,), 0, vocab, dtype=jnp.int32)

    out, w_dq = sce_forward(table, weights, h, x, num_bits=8, seed=0)
    out = jax.block_until_ready(out)

    # sanity check 1: the one-hot matmul kernel vs a pure-JAX gather reference
    ref = jnp.einsum("bc,bcd->bd", w_dq[x], table[h[x]],
                     precision=jax.lax.Precision.HIGHEST)
    np.testing.assert_allclose(np.asarray(out), np.asarray(ref),
                               rtol=1e-3, atol=1e-3)

    # sanity check 2: quant-dequant error is bounded by ~2 quantization steps
    scale = float((weights.max() - weights.min()) / 255.0)
    assert float(jnp.max(jnp.abs(w_dq - weights))) <= 2.0 * scale + 1e-6

    print("KERNEL_OK")
</pallas_src>

<mosaic_0001>
module attributes {stable_mosaic.version = 11 : i64} {
  func.func @_quant_dequant_kernel(%arg0: memref<32x8xf32, #tpu.memory_space<vmem>>, %arg1: memref<32x8xf32, #tpu.memory_space<vmem>>, %arg2: memref<32x8xf32, #tpu.memory_space<vmem>>) attributes {dimension_semantics = [], scalar_prefetch = 0 : i64, scratch_operands = 0 : i64, tpu.core_type = #tpu.core_type<tc>} {
    %c0 = arith.constant 0 : index
    %c0_0 = arith.constant 0 : index
    %0 = vector.load %arg0[%c0, %c0_0] : memref<32x8xf32, #tpu.memory_space<vmem>>, vector<32x8xf32>
    %c0_1 = arith.constant 0 : index
    %c0_2 = arith.constant 0 : index
    %1 = vector.load %arg1[%c0_1, %c0_2] : memref<32x8xf32, #tpu.memory_space<vmem>>, vector<32x8xf32>
    %2 = vector.shape_cast %0 : vector<32x8xf32> to vector<1x32x8xf32>
    %cst = arith.constant dense<0x7F800000> : vector<1xf32>
    %3 = vector.multi_reduction <minimumf>, %2, %cst [1, 2] : vector<1x32x8xf32> to vector<1xf32>
    %4 = vector.shape_cast %3 : vector<1xf32> to vector<1x1x1xf32>
    %5 = vector.extract %4[0, 0, 0] : f32 from vector<1x1x1xf32>
    %6 = vector.shape_cast %0 : vector<32x8xf32> to vector<1x32x8xf32>
    %cst_3 = arith.constant dense<0xFF800000> : vector<1xf32>
    %7 = vector.multi_reduction <maximumf>, %6, %cst_3 [1, 2] : vector<1x32x8xf32> to vector<1xf32>
    %8 = vector.shape_cast %7 : vector<1xf32> to vector<1x1x1xf32>
    %9 = vector.extract %8[0, 0, 0] : f32 from vector<1x1x1xf32>
    %10 = arith.subf %9, %5 : f32
    %cst_4 = arith.constant 0.000000e+00 : f32
    %11 = arith.cmpf ogt, %10, %cst_4 : f32
    %cst_5 = arith.constant 2.550000e+02 : f32
    %12 = arith.divf %10, %cst_5 : f32
    %cst_6 = arith.constant 1.000000e+00 : f32
    %13 = arith.select %11, %12, %cst_6 : f32
    %cst_7 = arith.constant 1.000000e+00 : f32
    %14 = arith.divf %cst_7, %13 : f32
    %15 = arith.mulf %5, %14 : f32
    %cst_8 = arith.constant -1.280000e+02 : f32
    %16 = arith.subf %cst_8, %15 : f32
    %17 = vector.broadcast %14 : f32 to vector<32x8xf32>
    %18 = arith.mulf %0, %17 : vector<32x8xf32>
    %19 = vector.broadcast %16 : f32 to vector<32x8xf32>
    %20 = arith.addf %18, %19 : vector<32x8xf32>
    %21 = math.floor %20 : vector<32x8xf32>
    %22 = arith.subf %20, %21 : vector<32x8xf32>
    %23 = arith.cmpf olt, %1, %22 : vector<32x8xf32>
    %24 = arith.extui %23 : vector<32x8xi1> to vector<32x8xi32>
    %25 = arith.sitofp %24 : vector<32x8xi32> to vector<32x8xf32>
    %26 = arith.addf %21, %25 : vector<32x8xf32>
    %cst_9 = arith.constant -1.280000e+02 : f32
    %cst_10 = arith.constant 1.270000e+02 : f32
    %27 = vector.broadcast %cst_9 : f32 to vector<32x8xf32>
    %28 = arith.maximumf %27, %26 : vector<32x8xf32>
    %29 = vector.broadcast %cst_10 : f32 to vector<32x8xf32>
    %30 = arith.minimumf %29, %28 : vector<32x8xf32>
    %31 = vector.broadcast %16 : f32 to vector<32x8xf32>
    %32 = arith.subf %30, %31 : vector<32x8xf32>
    %33 = vector.broadcast %13 : f32 to vector<32x8xf32>
    %34 = arith.mulf %33, %32 : vector<32x8xf32>
    %35 = arith.select %11, %34, %0 : vector<32x8xf32>
    %c0_11 = arith.constant 0 : index
    %c0_12 = arith.constant 0 : index
    %36 = vector.load %arg2[%c0_11, %c0_12] : memref<32x8xf32, #tpu.memory_space<vmem>>, vector<32x8xf32>
    tpu.vector_store %arg2[%c0_11, %c0_12], %35 {strides = array<i32>} : memref<32x8xf32, #tpu.memory_space<vmem>>, vector<32x8xf32>,
    return
  }
}

</mosaic_0001>

<bundles_post_ra>
// kernel: tpu_custom_call.1
= control target key start
LH: loop header
LB: loop body
LE: loop exit
PB: predicated region body
PF: predicated region fallthrough
CT: control target
= control target key end

     0   :  { %vm19_vm0 = vcmask 64512   ;;  %v142_v56 = vmov 0.0   ;;  %s238_s0 = inlined_call_operand.vmem [shape: f32[32,8], index: 0, kind: input, shape index: {}]   ;;  %s239_s1 = inlined_call_operand.vmem [shape: f32[32,8], index: 1, kind: input, shape index: {}]   ;;  %s240_s2 = inlined_call_operand.vmem [shape: f32[32,8], index: 2, kind: output, shape index: {}]  }
   0x1   :  { %v161_v0 = vld [vmem:[%s238_s0] sm:$0xff]  ;;  %v166_v1 = vld [vmem:[%s238_s0 + $0x8] sm:$0xff]  ;;  %v171_v2 = vld [vmem:[%s238_s0 + $0x10] sm:$0xff] }
   0x2   :  { %v176_v3 = vld [vmem:[%s238_s0 + $0x18] sm:$0xff]  ;;  %v20_v4 = vsel %vm19_vm0, %v161_v0, inf  ;;  %v21_v5 = vsel %vm19_vm0, %v166_v1, inf  ;;  %v22_v6 = vsel %vm19_vm0, %v171_v2, inf  ;;  %v36_v7 = vsel %vm19_vm0, %v161_v0, -inf  ;;  %v15_v44 = vld [vmem:[%s239_s1] sm:$0xff] }
   0x3   :  { %v23_v8 = vsel %vm19_vm0, %v176_v3, inf  ;;  %v24_v9 = vmin.f32 %v20_v4, %v21_v5  ;;  %v37_v10 = vsel %vm19_vm0, %v166_v1, -inf  ;;  %v38_v11 = vsel %vm19_vm0, %v171_v2, -inf  ;;  %v16_v49 = vld [vmem:[%s239_s1 + $0x8] sm:$0xff]  ;;  %v17_v50 = vld [vmem:[%s239_s1 + $0x10] sm:$0xff]  ;;  %v18_v51 = vld [vmem:[%s239_s1 + $0x18] sm:$0xff] }
   0x4   :  { %v25_v12 = vmin.f32 %v22_v6, %v23_v8  ;;  %v39_v13 = vsel %vm19_vm0, %v176_v3, -inf  ;;  %v40_v14 = vmax.f32 %v36_v7, %v37_v10 }
   0x5   :  { %v41_v15 = vmax.f32 %v38_v11, %v39_v13 }
   0x6   :  { %v26_v16 = vmin.f32 %v24_v9, %v25_v12 }
   0x7   :  { %v42_v17 = vmax.f32 %v40_v14, %v41_v15 }
   0x8   :  { %27 = vmin.xlane.f32.xlu0 %v26_v16 }
   0xc   :  { %43 = vmax.xlane.f32.xlu0 %v42_v17 }
  0x95   :  { %v28_v18 = vpop.xlane.xlu0 %27 }
  0x96   :  { %v29_v19 = vrot.slane %v28_v18, 4 }
  0x98   :  { %v30_v20 = vmin.f32 %v28_v18, %v29_v19 }
  0x99   :  { %v44_v21 = vpop.xlane.xlu0 %43 }
  0x9a   :  { %v31_v22 = vrot.slane %v30_v20, 2  ;;  %v45_v23 = vrot.slane %v44_v21, 4 }
  0x9c   :  { %v46_v24 = vmax.f32 %v44_v21, %v45_v23  ;;  %v32_v25 = vmin.f32 %v30_v20, %v31_v22 }
  0x9e   :  { %v47_v26 = vrot.slane %v46_v24, 2  ;;  %v33_v27 = vrot.slane %v32_v25, 1 }
  0xa0   :  { %v48_v28 = vmax.f32 %v46_v24, %v47_v26  ;;  %v34_v29 = vmin.f32 %v32_v25, %v33_v27 }
  0xa2   :  { %133 = vpush %v34_v29  ;;  %v49_v30 = vrot.slane %v48_v28, 1 }
  0xa4   :  { %v50_v31 = vmax.f32 %v48_v28, %v49_v30 }
  0xa6   :  { %135 = vpush %v50_v31 }
  0xd3   :  { %s134_s0 = spop %133 }
  0xd7   :  { %s136_s17 = spop %135 }
  0xd8   :  { %s194_s18 = ssub.f32 %s136_s17, %s134_s0 }
  0xda   :  { %p53_p0 = scmp.gt.f32.partialorder %s194_s18, 0.0  ;;  %s56_s19 = smul.f32 0.003921569, %s194_s18 }
  0xdc   :  { %s242_s19 = smov (!%p53_p0, %s56_s19), 1.0 }
  0xdd   :  { %v58_v32 = vstv %s242_s19  ;;  %s114_s1 = scalar_select %p53_p0, 1, 0 }
  0xde   :  { %140 = vrcp.f32 %v58_v32 }
  0xdf   :  { %v115_v13 = vstv %s114_s1 }
  0xe0   :  { %vm116_vm5 = vcmp.eq.s32.totalorder %v115_v13, 1 }
  0xe8   :  { %v141_v33 = vpop.eup %140 }
  0xe9   :  { %137 = vpush %v141_v33 }
 0x11a   :  { %s138_s20 = spop %137 }
 0x11b   :  { %s61_s21 = smul.f32 %s138_s20, %s134_s0  ;;  %v63_v34 = vstv %s138_s20 }
 0x11c   :  { %v64_v35 = vmul.f32 %v63_v34, %v161_v0  ;;  %v65_v36 = vmul.f32 %v63_v34, %v166_v1  ;;  %v66_v37 = vmul.f32 %v63_v34, %v171_v2  ;;  %v67_v38 = vmul.f32 %v63_v34, %v176_v3 }
 0x11d   :  { %s62_s22 = ssub.f32 -128.0, %s61_s21 }
 0x11f   :  { %v68_v39 = vstv %s62_s22 }
 0x120   :  { %v69_v40 = vadd.f32 %v68_v39, %v64_v35  ;;  %v70_v41 = vadd.f32 %v68_v39, %v65_v36  ;;  %v71_v42 = vadd.f32 %v68_v39, %v66_v37  ;;  %v72_v43 = vadd.f32 %v68_v39, %v67_v38 }
 0x122   :  { %v73_v45 = vfloor.f32 %v69_v40  ;;  %v74_v46 = vfloor.f32 %v70_v41  ;;  %v75_v47 = vfloor.f32 %v71_v42  ;;  %v76_v48 = vfloor.f32 %v72_v43 }
 0x124   :  { %v77_v52 = vsub.f32 %v69_v40, %v73_v45  ;;  %v78_v53 = vsub.f32 %v70_v41, %v74_v46  ;;  %v79_v54 = vsub.f32 %v71_v42, %v75_v47  ;;  %v80_v55 = vsub.f32 %v72_v43, %v76_v48 }
 0x126   :  { %vm81_vm1 = vcmp.lt.f32.partialorder %v15_v44, %v77_v52  ;;  %vm82_vm2 = vcmp.lt.f32.partialorder %v16_v49, %v78_v53  ;;  %vm83_vm3 = vcmp.lt.f32.partialorder %v17_v50, %v79_v54  ;;  %vm84_vm4 = vcmp.lt.f32.partialorder %v18_v51, %v80_v55 }
 0x127   :  { %v129_v57 = vsel %vm81_vm1, 1.0, %v142_v56  ;;  %v130_v58 = vsel %vm82_vm2, 1.0, %v142_v56  ;;  %v131_v59 = vsel %vm83_vm3, 1.0, %v142_v56  ;;  %v132_v60 = vsel %vm84_vm4, 1.0, %v142_v56 }
 0x128   :  { %v93_v61 = vadd.f32 %v129_v57, %v73_v45  ;;  %v94_v62 = vadd.f32 %v130_v58, %v74_v46  ;;  %v95_v63 = vadd.f32 %v131_v59, %v75_v47  ;;  %v96_v4 = vadd.f32 %v132_v60, %v76_v48 }
 0x12a   :  { %v97_v5 = vmax.f32 %v93_v61, -128.0  ;;  %v98_v6 = vmax.f32 %v94_v62, -128.0  ;;  %v99_v7 = vmax.f32 %v95_v63, -128.0  ;;  %v100_v8 = vmax.f32 %v96_v4, -128.0 }
 0x12c   :  { %v101_v9 = vmin.f32 %v97_v5, 127.0  ;;  %v102_v10 = vmin.f32 %v98_v6, 127.0  ;;  %v103_v11 = vmin.f32 %v99_v7, 127.0  ;;  %v104_v12 = vmin.f32 %v100_v8, 127.0 }
 0x12e   :  { %v105_v14 = vsub.f32 %v101_v9, %v68_v39  ;;  %v106_v15 = vsub.f32 %v102_v10, %v68_v39  ;;  %v107_v16 = vsub.f32 %v103_v11, %v68_v39  ;;  %v108_v17 = vsub.f32 %v104_v12, %v68_v39 }
 0x130   :  { %v110_v18 = vmul.f32 %v105_v14, %v58_v32  ;;  %v111_v19 = vmul.f32 %v106_v15, %v58_v32  ;;  %v112_v20 = vmul.f32 %v107_v16, %v58_v32  ;;  %v113_v21 = vmul.f32 %v108_v17, %v58_v32 }
 0x132   :  { %v117_v22 = vsel %vm116_vm5, %v110_v18, %v161_v0  ;;  %v118_v23 = vsel %vm116_vm5, %v111_v19, %v166_v1  ;;  %v119_v24 = vsel %vm116_vm5, %v112_v20, %v171_v2  ;;  %v120_v25 = vsel %vm116_vm5, %v113_v21, %v176_v3 }
 0x133   :  { %121 = vst.msk [vmem:[%s240_s2] sm:$0xff] %vm19_vm0, %v117_v22  ;;  %122 = vst.msk [vmem:[%s240_s2 + $0x8] sm:$0xff] %vm19_vm0, %v118_v23 }
 0x134   :  { %123 = vst.msk [vmem:[%s240_s2 + $0x10] sm:$0xff] %vm19_vm0, %v119_v24  ;;  %124 = vst.msk [vmem:[%s240_s2 + $0x18] sm:$0xff] %vm19_vm0, %v120_v25 }

</bundles_post_ra>
